<compile_context>
chip_gen: v7x
topology: tpu7x:2x2x1
jax: 0.10.0
libtpu: 0.0.40
codegen_flags: <defaults>
</compile_context>

<pallas_src>
import functools

import jax
import jax.numpy as jnp
from jax.experimental import pallas as pl
from jax.experimental.pallas import tpu as pltpu

MICRO_ITER = 8                         # `micro_iter` from the PyTorch module
_MAX_W_TILE_BYTES = 8 * 1024 * 1024    # <= 8 MiB weight tile so Buffered(3) fits v7x scoped VMEM
_VMEM_LIMIT_BYTES = 30 * 1024 * 1024   # safe on v5e/v6e (128 MiB phys) and v7x (64 MiB phys)


def _pick_tile(extent, preferred):
    """Largest tile <= preferred that evenly divides `extent`; falls back to the full extent."""
    for t in (preferred, preferred // 2, preferred // 4, 512, 256, 128):
        if 0 < t <= extent and extent % t == 0:
            return t
    return extent  # full-extent block is always layout-legal; caller enforces a byte budget


def linear_kernel(x_ref, w_ref, b_ref, o_ref, acc_ref):
    """One (M, tn) output slab of y = x @ W_t + b, reduced over the K grid axis.

    x_ref  : (M, tk)  activations, already in the compute dtype (bf16)
    w_ref  : (tk, tn) weight tile in (in, out) layout -> MXU-native NN contraction
    b_ref  : (1, tn)  f32 bias tile (initializes the accumulator at k == 0)
    acc_ref: (M, tn)  f32 accumulator scratch, resident across the K grid axis
    """
    k = pl.program_id(1)

    @pl.when(k == 0)
    def _():
        acc_ref[...] = jnp.broadcast_to(b_ref[...], acc_ref.shape)

    acc_ref[...] += jnp.dot(
        x_ref[...], w_ref[...], preferred_element_type=jnp.float32
    )

    @pl.when(k == pl.num_programs(1) - 1)
    def _():
        o_ref[...] = acc_ref[...].astype(o_ref.dtype)


def linear(x, w_t, b2, *, out_dtype, tn_max=2048, tk_max=2048):
    """y = x @ w_t + b with w_t in (in_dim, out_dim) layout and b2 of shape (1, out_dim)."""
    M, K = x.shape
    Kw, N = w_t.shape
    assert K == Kw, "weight in_dim must match activation feature dim"
    assert b2.shape == (1, N)

    w_itemsize = jnp.dtype(w_t.dtype).itemsize
    x_itemsize = jnp.dtype(x.dtype).itemsize
    o_itemsize = jnp.dtype(out_dtype).itemsize

    tn = _pick_tile(N, tn_max)
    tk_budget = max(128, _MAX_W_TILE_BYTES // (tn * w_itemsize))
    tk = _pick_tile(K, min(tk_max, tk_budget))

    if tk * tn * w_itemsize > _MAX_W_TILE_BYTES:
        raise ValueError(
            f"weight tile {tk}x{tn} ({tk * tn * w_itemsize} bytes) exceeds the "
            f"{_MAX_W_TILE_BYTES}-byte per-tile VMEM budget; pad dim to a multiple of 128."
        )

    grid = (N // tn, K // tk)

    # Triple-buffer the weight stream (the dominant HBM traffic) whenever there is an
    # actual pipeline to fill; keeps DMA issue continuous across step / j boundaries.
    w_pipeline = pl.Buffered(3) if grid[0] * grid[1] >= 3 else None

    cost = pl.CostEstimate(
        flops=2 * M * N * K,
        transcendentals=0,
        bytes_accessed=(
            M * K * x_itemsize * grid[0]   # activations are re-streamed once per N block
            + K * N * w_itemsize           # weight streamed exactly once
            + N * 4                        # bias
            + M * N * o_itemsize           # output
        ),
    )

    return pl.pallas_call(
        linear_kernel,
        out_shape=jax.ShapeDtypeStruct((M, N), out_dtype),
        grid_spec=pltpu.PrefetchScalarGridSpec(
            num_scalar_prefetch=0,
            grid=grid,
            in_specs=[
                pl.BlockSpec((M, tk), lambda j, k: (0, k)),                 # activations
                pl.BlockSpec((tk, tn), lambda j, k: (k, j),
                             pipeline_mode=w_pipeline),                     # weight (in, out)
                pl.BlockSpec((1, tn), lambda j, k: (0, j)),                 # bias
            ],
            out_specs=pl.BlockSpec((M, tn), lambda j, k: (0, j)),
            scratch_shapes=[pltpu.VMEM((M, tn), jnp.float32)],
        ),
        compiler_params=pltpu.CompilerParams(
            dimension_semantics=("parallel", "arbitrary"),
            vmem_limit_bytes=_VMEM_LIMIT_BYTES,
        ),
        cost_estimate=cost,
    )(x, w_t, b2)


@functools.partial(jax.jit, static_argnames=("compute_dtype",))
def pure_matmul_forward(x, w, b, compute_dtype=jnp.bfloat16):
    """Forward pass of PureMatMut: apply the same Linear layer MICRO_ITER times.

    `w` is in PyTorch (out_dim, in_dim) layout; the transpose is folded into the one-time
    cast to `compute_dtype`. Activations stay in `compute_dtype` between micro-iterations;
    accumulation and the bias add are f32 inside the kernel; the final output is x.dtype.
    """
    # TODO(synk): torch.distributed.barrier() is a multi-process sync with no
    # single-device Pallas equivalent; omitted.
    out_dtype = x.dtype
    w_t = w.T.astype(compute_dtype)          # one-time transpose + cast -> contiguous (in, out)
    b2 = b.reshape(1, -1).astype(jnp.float32)
    x = x.astype(compute_dtype)
    for i in range(MICRO_ITER):
        last = i == MICRO_ITER - 1
        x = linear(x, w_t, b2, out_dtype=out_dtype if last else compute_dtype)
    return x


if __name__ == "__main__":
    # Small shapes consistent with the module (the original dim=12288 is too large for a demo).
    batch, dim = 8, 256
    dtype = jnp.float32

    key = jax.random.PRNGKey(0)
    kx, kw, kb = jax.random.split(key, 3)

    # Deterministic PyTorch-like init: uniform(-1/sqrt(fan_in), 1/sqrt(fan_in)).
    bound = 1.0 / (dim ** 0.5)
    x = jax.random.normal(kx, (batch, dim), dtype=dtype)
    w = jax.random.uniform(kw, (dim, dim), dtype=dtype, minval=-bound, maxval=bound)  # (out, in)
    b = jax.random.uniform(kb, (dim,), dtype=dtype, minval=-bound, maxval=bound)

    out = jax.block_until_ready(pure_matmul_forward(x, w, b))

    # Pure-JAX reference mirroring the kernel's numerics:
    # bf16 weights/activations, f32 accumulation + f32 bias, bf16 between iterations.
    w_t_bf16 = w.T.astype(jnp.bfloat16)
    ref = x.astype(jnp.bfloat16)
    for i in range(MICRO_ITER):
        y = jnp.dot(ref, w_t_bf16, preferred_element_type=jnp.float32) + b
        ref = y.astype(jnp.bfloat16) if i < MICRO_ITER - 1 else y.astype(dtype)

    assert out.shape == (batch, dim)
    assert out.dtype == dtype
    assert jnp.allclose(out, ref, rtol=2e-2, atol=2e-2), (
        "mismatch vs reference, max abs diff = "
        f"{float(jnp.max(jnp.abs(out - ref)))}"
    )

    print("KERNEL_OK")
</pallas_src>

<mosaic_0001>
module attributes {stable_mosaic.version = 11 : i64} {
  func.func @linear_kernel(%arg0: i32, %arg1: i32, %arg2: memref<8x256xbf16, #tpu.memory_space<vmem>>, %arg3: memref<256x256xbf16, #tpu.memory_space<vmem>>, %arg4: memref<1x256xf32, #tpu.memory_space<vmem>>, %arg5: memref<8x256xbf16, #tpu.memory_space<vmem>>, %arg6: memref<8x256xf32, #tpu.memory_space<vmem>>) attributes {dimension_semantics = [#tpu.dimension_semantics<parallel>, #tpu.dimension_semantics<arbitrary>], iteration_bounds = array<i64: 1, 1>, scalar_prefetch = 0 : i64, scratch_operands = 1 : i64, tpu.core_type = #tpu.core_type<tc>, window_params = [{transform_indices = @transform_0, window_bounds = array<i64: 8, 256>}, {transform_indices = @transform_1, window_bounds = array<i64: 256, 256>}, {transform_indices = @transform_2, window_bounds = array<i64: 1, 256>}, {transform_indices = @transform_3, window_bounds = array<i64: 8, 256>}]} {
    %c0_i32 = arith.constant 0 : i32
    %0 = arith.cmpi eq, %arg1, %c0_i32 : i32
    %1 = arith.extui %0 : i1 to i32
    %c0_i32_0 = arith.constant 0 : i32
    %2 = arith.cmpi ne, %1, %c0_i32_0 : i32
    scf.if %2 {
      %c0_10 = arith.constant 0 : index
      %c0_11 = arith.constant 0 : index
      %12 = vector.load %arg4[%c0_10, %c0_11] : memref<1x256xf32, #tpu.memory_space<vmem>>, vector<1x256xf32>
      %13 = vector.shape_cast %12 : vector<1x256xf32> to vector<1x256xf32>
      %14 = vector.broadcast %13 : vector<1x256xf32> to vector<8x256xf32>
      %c0_12 = arith.constant 0 : index
      %c0_13 = arith.constant 0 : index
      %15 = vector.load %arg6[%c0_12, %c0_13] : memref<8x256xf32, #tpu.memory_space<vmem>>, vector<8x256xf32>
      tpu.vector_store %arg6[%c0_12, %c0_13], %14 {strides = array<i32>} : memref<8x256xf32, #tpu.memory_space<vmem>>, vector<8x256xf32>,
    } else {
    }
    %c0 = arith.constant 0 : index
    %c0_1 = arith.constant 0 : index
    %3 = vector.load %arg6[%c0, %c0_1] : memref<8x256xf32, #tpu.memory_space<vmem>>, vector<8x256xf32>
    %c0_2 = arith.constant 0 : index
    %c0_3 = arith.constant 0 : index
    %4 = vector.load %arg2[%c0_2, %c0_3] : memref<8x256xbf16, #tpu.memory_space<vmem>>, vector<8x256xbf16>
    %c0_4 = arith.constant 0 : index
    %c0_5 = arith.constant 0 : index
    %5 = vector.load %arg3[%c0_4, %c0_5] : memref<256x256xbf16, #tpu.memory_space<vmem>>, vector<256x256xbf16>
    %cst = arith.constant dense<0.000000e+00> : vector<8x256xf32>
    %6 = tpu.matmul %4, %5, %cst {dimension_numbers = #tpu.dot_dimension_numbers<[1], [0], [0], [1], [0, 0, 1, 1], [], []>} : vector<8x256xbf16>, vector<256x256xbf16>, vector<8x256xf32> -> vector<8x256xf32>
    %7 = arith.addf %3, %6 : vector<8x256xf32>
    %c0_6 = arith.constant 0 : index
    %c0_7 = arith.constant 0 : index
    %8 = vector.load %arg6[%c0_6, %c0_7] : memref<8x256xf32, #tpu.memory_space<vmem>>, vector<8x256xf32>
    tpu.vector_store %arg6[%c0_6, %c0_7], %7 {strides = array<i32>} : memref<8x256xf32, #tpu.memory_space<vmem>>, vector<8x256xf32>,
    %c0_i32_8 = arith.constant 0 : i32
    %9 = arith.cmpi eq, %arg1, %c0_i32_8 : i32
    %10 = arith.extui %9 : i1 to i32
    %c0_i32_9 = arith.constant 0 : i32
    %11 = arith.cmpi ne, %10, %c0_i32_9 : i32
    scf.if %11 {
      %c0_10 = arith.constant 0 : index
      %c0_11 = arith.constant 0 : index
      %12 = vector.load %arg6[%c0_10, %c0_11] : memref<8x256xf32, #tpu.memory_space<vmem>>, vector<8x256xf32>
      %13 = arith.truncf %12 : vector<8x256xf32> to vector<8x256xbf16>
      %c0_12 = arith.constant 0 : index
      %c0_13 = arith.constant 0 : index
      %14 = vector.load %arg5[%c0_12, %c0_13] : memref<8x256xbf16, #tpu.memory_space<vmem>>, vector<8x256xbf16>
      tpu.vector_store %arg5[%c0_12, %c0_13], %13 {strides = array<i32>} : memref<8x256xbf16, #tpu.memory_space<vmem>>, vector<8x256xbf16>,
    } else {
    }
    return
  }
  func.func @transform_0(%arg0: i32, %arg1: i32) -> (i32, i32) {
    %c0_i32 = arith.constant 0 : i32
    %c0_i32_0 = arith.constant 0 : i32
    return %c0_i32, %arg1 : i32, i32
  }
  func.func @transform_1(%arg0: i32, %arg1: i32) -> (i32, i32) {
    %c0_i32 = arith.constant 0 : i32
    return %arg1, %arg0 : i32, i32
  }
  func.func @transform_2(%arg0: i32, %arg1: i32) -> (i32, i32) {
    %c0_i32 = arith.constant 0 : i32
    %c0_i32_0 = arith.constant 0 : i32
    return %c0_i32, %arg0 : i32, i32
  }
  func.func @transform_3(%arg0: i32, %arg1: i32) -> (i32, i32) {
    %c0_i32 = arith.constant 0 : i32
    %c0_i32_0 = arith.constant 0 : i32
    return %c0_i32, %arg0 : i32, i32
  }
}

module attributes {stable_mosaic.version = 11 : i64} {
  func.func @linear_kernel(%arg0: i32, %arg1: i32, %arg2: memref<8x256xbf16, #tpu.memory_space<vmem>>, %arg3: memref<256x256xbf16, #tpu.memory_space<vmem>>, %arg4: memref<1x256xf32, #tpu.memory_space<vmem>>, %arg5: memref<8x256xf32, #tpu.memory_space<vmem>>, %arg6: memref<8x256xf32, #tpu.memory_space<vmem>>) attributes {dimension_semantics = [#tpu.dimension_semantics<parallel>, #tpu.dimension_semantics<arbitrary>], iteration_bounds = array<i64: 1, 1>, scalar_prefetch = 0 : i64, scratch_operands = 1 : i64, tpu.core_type = #tpu.core_type<tc>, window_params = [{transform_indices = @transform_0, window_bounds = array<i64: 8, 256>}, {transform_indices = @transform_1, window_bounds = array<i64: 256, 256>}, {transform_indices = @transform_2, window_bounds = array<i64: 1, 256>}, {transform_indices = @transform_3, window_bounds = array<i64: 8, 256>}]} {
    %c0_i32 = arith.constant 0 : i32
    %0 = arith.cmpi eq, %arg1, %c0_i32 : i32
    %1 = arith.extui %0 : i1 to i32
    %c0_i32_0 = arith.constant 0 : i32
    %2 = arith.cmpi ne, %1, %c0_i32_0 : i32
    scf.if %2 {
      %c0_10 = arith.constant 0 : index
      %c0_11 = arith.constant 0 : index
      %12 = vector.load %arg4[%c0_10, %c0_11] : memref<1x256xf32, #tpu.memory_space<vmem>>, vector<1x256xf32>
      %13 = vector.shape_cast %12 : vector<1x256xf32> to vector<1x256xf32>
      %14 = vector.broadcast %13 : vector<1x256xf32> to vector<8x256xf32>
      %c0_12 = arith.constant 0 : index
      %c0_13 = arith.constant 0 : index
      %15 = vector.load %arg6[%c0_12, %c0_13] : memref<8x256xf32, #tpu.memory_space<vmem>>, vector<8x256xf32>
      tpu.vector_store %arg6[%c0_12, %c0_13], %14 {strides = array<i32>} : memref<8x256xf32, #tpu.memory_space<vmem>>, vector<8x256xf32>,
    } else {
    }
    %c0 = arith.constant 0 : index
    %c0_1 = arith.constant 0 : index
    %3 = vector.load %arg6[%c0, %c0_1] : memref<8x256xf32, #tpu.memory_space<vmem>>, vector<8x256xf32>
    %c0_2 = arith.constant 0 : index
    %c0_3 = arith.constant 0 : index
    %4 = vector.load %arg2[%c0_2, %c0_3] : memref<8x256xbf16, #tpu.memory_space<vmem>>, vector<8x256xbf16>
    %c0_4 = arith.constant 0 : index
    %c0_5 = arith.constant 0 : index
    %5 = vector.load %arg3[%c0_4, %c0_5] : memref<256x256xbf16, #tpu.memory_space<vmem>>, vector<256x256xbf16>
    %cst = arith.constant dense<0.000000e+00> : vector<8x256xf32>
    %6 = tpu.matmul %4, %5, %cst {dimension_numbers = #tpu.dot_dimension_numbers<[1], [0], [0], [1], [0, 0, 1, 1], [], []>} : vector<8x256xbf16>, vector<256x256xbf16>, vector<8x256xf32> -> vector<8x256xf32>
    %7 = arith.addf %3, %6 : vector<8x256xf32>
    %c0_6 = arith.constant 0 : index
    %c0_7 = arith.constant 0 : index
    %8 = vector.load %arg6[%c0_6, %c0_7] : memref<8x256xf32, #tpu.memory_space<vmem>>, vector<8x256xf32>
    tpu.vector_store %arg6[%c0_6, %c0_7], %7 {strides = array<i32>} : memref<8x256xf32, #tpu.memory_space<vmem>>, vector<8x256xf32>,
    %c0_i32_8 = arith.constant 0 : i32
    %9 = arith.cmpi eq, %arg1, %c0_i32_8 : i32
    %10 = arith.extui %9 : i1 to i32
    %c0_i32_9 = arith.constant 0 : i32
    %11 = arith.cmpi ne, %10, %c0_i32_9 : i32
    scf.if %11 {
      %c0_10 = arith.constant 0 : index
      %c0_11 = arith.constant 0 : index
      %12 = vector.load %arg6[%c0_10, %c0_11] : memref<8x256xf32, #tpu.memory_space<vmem>>, vector<8x256xf32>
      %c0_12 = arith.constant 0 : index
      %c0_13 = arith.constant 0 : index
      %13 = vector.load %arg5[%c0_12, %c0_13] : memref<8x256xf32, #tpu.memory_space<vmem>>, vector<8x256xf32>
      tpu.vector_store %arg5[%c0_12, %c0_13], %12 {strides = array<i32>} : memref<8x256xf32, #tpu.memory_space<vmem>>, vector<8x256xf32>,
    } else {
    }
    return
  }
  func.func @transform_0(%arg0: i32, %arg1: i32) -> (i32, i32) {
    %c0_i32 = arith.constant 0 : i32
    %c0_i32_0 = arith.constant 0 : i32
    return %c0_i32, %arg1 : i32, i32
  }
  func.func @transform_1(%arg0: i32, %arg1: i32) -> (i32, i32) {
    %c0_i32 = arith.constant 0 : i32
    return %arg1, %arg0 : i32, i32
  }
  func.func @transform_2(%arg0: i32, %arg1: i32) -> (i32, i32) {
    %c0_i32 = arith.constant 0 : i32
    %c0_i32_0 = arith.constant 0 : i32
    return %c0_i32, %arg0 : i32, i32
  }
  func.func @transform_3(%arg0: i32, %arg1: i32) -> (i32, i32) {
    %c0_i32 = arith.constant 0 : i32
    %c0_i32_0 = arith.constant 0 : i32
    return %c0_i32, %arg0 : i32, i32
  }
}

</mosaic_0001>

<bundles_post_ra>
// kernel: pure_matmul_forward.15
= control target key start
LH: loop header
LB: loop body
LE: loop exit
PB: predicated region body
PF: predicated region fallthrough
CT: control target
= control target key end

     0   :  { %s545_s0 = inlined_call_operand.vmem [shape: bf16[8,256], index: 0, kind: input, shape index: {}]   ;;  %s546_s1 = inlined_call_operand.vmem [shape: bf16[256,256], index: 1, kind: input, shape index: {}]   ;;  %s547_s2 = inlined_call_operand.vmem [shape: f32[1,256], index: 2, kind: input, shape index: {}]   ;;  %s548_s3 = inlined_call_operand.hbm [shape: f32[8,256], index: 3, kind: output, shape index: {}]  }
   0x1   :  { %v336_v0 = vld [vmem:[%s546_s1 + $0x4] ss:$8 sps:$4 sm:$0xff]   ;;  %v338_v1 = vld [vmem:[%s546_s1] ss:$8 sps:$4 sm:$0xff]   ;;  %v339_v2 = vld [vmem:[%s546_s1 + $0x14] ss:$8 sps:$4 sm:$0xff]  }
   0x2   :  { %235 = vmatprep.subr.bf16.mxu0 %v336_v0  ;;  %v341_v3 = vld [vmem:[%s546_s1 + $0x10] ss:$8 sps:$4 sm:$0xff]   ;;  %v342_v4 = vld [vmem:[%s546_s1 + $0x24] ss:$8 sps:$4 sm:$0xff]   ;;  %v344_v5 = vld [vmem:[%s546_s1 + $0x20] ss:$8 sps:$4 sm:$0xff]  }
   0x3   :  { %236 = vmatpush1.bf16.msra.mxu0 %v338_v1  ;;  %v345_v6 = vld [vmem:[%s546_s1 + $0x34] ss:$8 sps:$4 sm:$0xff]   ;;  %v347_v7 = vld [vmem:[%s546_s1 + $0x30] ss:$8 sps:$4 sm:$0xff]   ;;  %v348_v8 = vld [vmem:[%s546_s1 + $0x44] ss:$8 sps:$4 sm:$0xff]  }
   0x4   :  { %237 = vmatprep.subr.bf16.mxu0 %v339_v2  ;;  %v350_v9 = vld [vmem:[%s546_s1 + $0x40] ss:$8 sps:$4 sm:$0xff]   ;;  %v351_v10 = vld [vmem:[%s546_s1 + $0x54] ss:$8 sps:$4 sm:$0xff]   ;;  %v353_v11 = vld [vmem:[%s546_s1 + $0x50] ss:$8 sps:$4 sm:$0xff]  }
   0x5   :  { %v354_v12 = vld [vmem:[%s546_s1 + $0x64] ss:$8 sps:$4 sm:$0xff]  }
   0x6   :  { %v35_v13 = vld [vmem:[%s545_s0] sm:$0xff] }
   0x7   :  { %238 = vmatpush1.bf16.msra.mxu0 %v341_v3  ;;  %v302_v14 = vcombine.high %v35_v13, %v35_v13 }
   0x8   :  { %239 = vmatprep.subr.bf16.mxu0 %v342_v4 }
   0xb   :  { %240 = vmatpush1.bf16.msra.mxu0 %v344_v5 }
   0xc   :  { %241 = vmatprep.subr.bf16.mxu0 %v345_v6 }
   0xf   :  { %242 = vmatpush1.bf16.msra.mxu0 %v347_v7 }
  0x10   :  { %243 = vmatprep.subr.bf16.mxu0 %v348_v8 }
  0x13   :  { %244 = vmatpush1.bf16.msra.mxu0 %v350_v9 }
  0x14   :  { %245 = vmatprep.subr.bf16.mxu0 %v351_v10 }
  0x15   :  { %8 = vsyncpa [#allocation4], 0  ;;  %v356_v15 = vld [vmem:[%s546_s1 + $0x60] ss:$8 sps:$4 sm:$0xff]   ;;  %v357_v16 = vld [vmem:[%s546_s1 + $0x74] ss:$8 sps:$4 sm:$0xff]   ;;  %267 = vmatprep.mubr.bf16.mxu0 %v302_v14  ;;  %v301_v34 = vcombine.low %v35_v13, %v35_v13  ;;  %v21_v35 = vlaneseq }
  0x16   :  { %v359_v17 = vld [vmem:[%s546_s1 + $0x70] ss:$8 sps:$4 sm:$0xff]   ;;  %v360_v18 = vld [vmem:[%s546_s1 + $0x84] ss:$8 sps:$4 sm:$0xff]   ;;  %v362_v19 = vld [vmem:[%s546_s1 + $0x80] ss:$8 sps:$4 sm:$0xff]  }
  0x17   :  { %246 = vmatpush1.bf16.msra.mxu0 %v353_v11  ;;  %v363_v20 = vld [vmem:[%s546_s1 + $0x94] ss:$8 sps:$4 sm:$0xff]   ;;  %v365_v21 = vld [vmem:[%s546_s1 + $0x90] ss:$8 sps:$4 sm:$0xff]   ;;  %v366_v22 = vld [vmem:[%s546_s1 + $0xa4] ss:$8 sps:$4 sm:$0xff]  }
  0x18   :  { %247 = vmatprep.subr.bf16.mxu0 %v354_v12  ;;  %v368_v23 = vld [vmem:[%s546_s1 + $0xa0] ss:$8 sps:$4 sm:$0xff]   ;;  %v369_v24 = vld [vmem:[%s546_s1 + $0xb4] ss:$8 sps:$4 sm:$0xff]   ;;  %v371_v25 = vld [vmem:[%s546_s1 + $0xb0] ss:$8 sps:$4 sm:$0xff]  }
  0x19   :  { %v372_v26 = vld [vmem:[%s546_s1 + $0xc4] ss:$8 sps:$4 sm:$0xff]   ;;  %v374_v27 = vld [vmem:[%s546_s1 + $0xc0] ss:$8 sps:$4 sm:$0xff]   ;;  %v375_v28 = vld [vmem:[%s546_s1 + $0xd4] ss:$8 sps:$4 sm:$0xff]  }
  0x1a   :  { %v377_v29 = vld [vmem:[%s546_s1 + $0xd0] ss:$8 sps:$4 sm:$0xff]   ;;  %v378_v30 = vld [vmem:[%s546_s1 + $0xe4] ss:$8 sps:$4 sm:$0xff]   ;;  %v380_v31 = vld [vmem:[%s546_s1 + $0xe0] ss:$8 sps:$4 sm:$0xff]  }
  0x1b   :  { %248 = vmatpush1.bf16.msra.mxu0 %v356_v15  ;;  %v381_v32 = vld [vmem:[%s546_s1 + $0xf4] ss:$8 sps:$4 sm:$0xff]   ;;  %v383_v33 = vld [vmem:[%s546_s1 + $0xf0] ss:$8 sps:$4 sm:$0xff]   ;;  %v22_v36 = vshrl.u32 %v21_v35, 7  ;;  %s410_s24 = smov [#allocation3]  }
  0x1c   :  { %249 = vmatprep.subr.bf16.mxu0 %v357_v16  ;;  %v19_v38 = vld [vmem:[%s547_s2] sm:$0x3]  ;;  %s293_s25 = sshll.u32 %s410_s24, 4  ;;  %s294_s25 = int_to_ptr.vmem [resolvable:$true] %s293_s25 }
  0x1d   :  { %v23_v37 = vsub.s32 0, %v22_v36  ;;  %v27_v39 = vsub.s32 1, %v22_v36  ;;  %s386_s1 = scalar_lea.vmem %s294_s25, 256  ;;  %p391_p1 = scmp.lt.s32.totalorder %s294_s25, %s294_s25 }
  0x1e   :  { %p387_p0 = scmp.ne.s32.totalorder %s294_s25, %s386_s1  ;;  %p392_p2 = scmp.lt.s32.totalorder %s386_s1, %s386_s1 }
  0x1f   :  { %250 = vmatpush1.bf16.msra.mxu0 %v359_v17  ;;  %v24_v40 = vrot.slane %v19_v38, %v23_v37  ;;  %v28_v41 = vrot.slane %v19_v38, %v27_v39 }
  0x20   :  { %251 = vmatprep.subr.bf16.mxu0 %v360_v18  ;;  %p393_p3 = por %p392_p2, %p391_p1 }
  0x22   :  { %p394_p4 = pnand %p393_p3, %p387_p0 }
  0x23   :  { %252 = vmatpush1.bf16.msra.mxu0 %v362_v19 }
  0x24   :  { %253 = vmatprep.subr.bf16.mxu0 %v363_v20 }
  0x27   :  { %254 = vmatpush1.bf16.msra.mxu0 %v365_v21 }
  0x28   :  { %255 = vmatprep.subr.bf16.mxu0 %v366_v22 }
  0x2b   :  { %256 = vmatpush1.bf16.msra.mxu0 %v368_v23 }
  0x2c   :  { %257 = vmatprep.subr.bf16.mxu0 %v369_v24 }
  0x2f   :  { %258 = vmatpush1.bf16.msra.mxu0 %v371_v25 }
  0x30   :  { %259 = vmatprep.subr.bf16.mxu0 %v372_v26 }
  0x33   :  { %260 = vmatpush1.bf16.msra.mxu0 %v374_v27 }
  0x34   :  { %261 = vmatprep.subr.bf16.mxu0 %v375_v28 }
  0x37   :  { %262 = vmatpush1.bf16.msra.mxu0 %v377_v29 }
  0x38   :  { %263 = vmatprep.subr.bf16.mxu0 %v378_v30 }
  0x3b   :  { %264 = vmatpush1.bf16.msra.mxu0 %v380_v31 }
  0x3c   :  { %265 = vmatprep.subr.bf16.mxu0 %v381_v32 }
  0x3f   :  { %266 = vmatpush1.bf16.msra.mxu0 %v383_v33 }
  0x42   :  { %268 = vmatmul.mubr.bf16.vlgmr.msra.gmra.mrb[0].mxu0 %v301_v34 }
 0x115   :  { %v269_v42 = vpop.f32.mrb[0].mxu0 }
 0x116   :  { %v276_v43 = vadd.f32 %v269_v42, %v24_v40  ;;  %v271_v44 = vpop.f32.mrb[1].mxu0 }
 0x117   :  { %v277_v45 = vadd.f32 %v271_v44, %v28_v41  ;;  %v273_v46 = vpop.f32.mrb[2].mxu0 }
 0x118   :  { %285 = vst [vmem:[#allocation3] sm:$0xff] %v276_v43  ;;  %v274_v47 = vpop.f32.mrb[3].mxu0 }
 0x119   :  { %286 = vst [vmem:[#allocation3 + $0x8] sm:$0xff] %v277_v45 }
 0x11a   :  { %397 = shalt.err (!%p394_p4)
}
 0x11b   :  { %s398_s27 = scalar_lea.hbm %s548_s3, 256 }
 0x11c   :  { %p399_p5 = scmp.ne.s32.totalorder %s548_s3, %s398_s27  ;;  %p402_p6 = scmp.lt.u32.totalorder %s398_s27, %s548_s3 }
 0x11e   :  { %p404_p7 = pnand %p402_p6, %p399_p5 }
 0x120   :  { %407 = shalt.err (!%p404_p7)
}
 0x121   :  { %296 = dma.vmem_to_hbm [thread:$0]  %s294_s25, 256, %s548_s3, [#allocation4]  }
 0x122   :  { %408 = dma.done.wait [#allocation4], 256  }
 0x123   :  { %409 = vsyncadd [#allocation4], 4294967040 }
 0x124   :  { %300 = vsyncpa [#allocation4], 1 }

// kernel: pure_matmul_forward.8
= control target key start
LH: loop header
LB: loop body
LE: loop exit
PB: predicated region body
PF: predicated region fallthrough
CT: control target
= control target key end

     0   :  { %v20_v35 = vlaneseq  ;;  %s508_s1 = inlined_call_operand.vmem [shape: bf16[256,256], index: 1, kind: input, shape index: {}]   ;;  %s509_s0 = inlined_call_operand.vmem [shape: bf16[8,256], index: 0, kind: input, shape index: {}]   ;;  %s510_s2 = inlined_call_operand.vmem [shape: f32[1,256], index: 2, kind: input, shape index: {}]   ;;  %s511_s3 = inlined_call_operand.vmem [shape: bf16[8,256], index: 3, kind: output, shape index: {}]  }
   0x1   :  { %v333_v0 = vld [vmem:[%s508_s1 + $0x4] ss:$8 sps:$4 sm:$0xff]   ;;  %v335_v1 = vld [vmem:[%s508_s1] ss:$8 sps:$4 sm:$0xff]   ;;  %v336_v2 = vld [vmem:[%s508_s1 + $0x14] ss:$8 sps:$4 sm:$0xff]  }
   0x2   :  { %234 = vmatprep.subr.bf16.mxu0 %v333_v0  ;;  %v338_v3 = vld [vmem:[%s508_s1 + $0x10] ss:$8 sps:$4 sm:$0xff]   ;;  %v339_v4 = vld [vmem:[%s508_s1 + $0x24] ss:$8 sps:$4 sm:$0xff]   ;;  %v341_v5 = vld [vmem:[%s508_s1 + $0x20] ss:$8 sps:$4 sm:$0xff]  }
   0x3   :  { %235 = vmatpush1.bf16.msra.mxu0 %v335_v1  ;;  %v342_v6 = vld [vmem:[%s508_s1 + $0x34] ss:$8 sps:$4 sm:$0xff]   ;;  %v344_v7 = vld [vmem:[%s508_s1 + $0x30] ss:$8 sps:$4 sm:$0xff]   ;;  %v345_v8 = vld [vmem:[%s508_s1 + $0x44] ss:$8 sps:$4 sm:$0xff]  }
   0x4   :  { %236 = vmatprep.subr.bf16.mxu0 %v336_v2  ;;  %v347_v9 = vld [vmem:[%s508_s1 + $0x40] ss:$8 sps:$4 sm:$0xff]   ;;  %v348_v10 = vld [vmem:[%s508_s1 + $0x54] ss:$8 sps:$4 sm:$0xff]   ;;  %v350_v11 = vld [vmem:[%s508_s1 + $0x50] ss:$8 sps:$4 sm:$0xff]  }
   0x5   :  { %v351_v12 = vld [vmem:[%s508_s1 + $0x64] ss:$8 sps:$4 sm:$0xff]   ;;  %v353_v15 = vld [vmem:[%s508_s1 + $0x60] ss:$8 sps:$4 sm:$0xff]   ;;  %v354_v16 = vld [vmem:[%s508_s1 + $0x74] ss:$8 sps:$4 sm:$0xff]  }
   0x6   :  { %v34_v13 = vld [vmem:[%s509_s0] sm:$0xff]  ;;  %v356_v17 = vld [vmem:[%s508_s1 + $0x70] ss:$8 sps:$4 sm:$0xff]   ;;  %v360_v20 = vld [vmem:[%s508_s1 + $0x94] ss:$8 sps:$4 sm:$0xff]   ;;  %v21_v36 = vshrl.u32 %v20_v35, 7 }
   0x7   :  { %237 = vmatpush1.bf16.msra.mxu0 %v338_v3  ;;  %v298_v14 = vcombine.high %v34_v13, %v34_v13  ;;  %v357_v18 = vld [vmem:[%s508_s1 + $0x84] ss:$8 sps:$4 sm:$0xff]   ;;  %v359_v19 = vld [vmem:[%s508_s1 + $0x80] ss:$8 sps:$4 sm:$0xff]   ;;  %v362_v21 = vld [vmem:[%s508_s1 + $0x90] ss:$8 sps:$4 sm:$0xff]   ;;  %v297_v34 = vcombine.low %v34_v13, %v34_v13 }
   0x8   :  { %238 = vmatprep.subr.bf16.mxu0 %v339_v4  ;;  %v363_v22 = vld [vmem:[%s508_s1 + $0xa4] ss:$8 sps:$4 sm:$0xff]   ;;  %v365_v23 = vld [vmem:[%s508_s1 + $0xa0] ss:$8 sps:$4 sm:$0xff]   ;;  %v366_v24 = vld [vmem:[%s508_s1 + $0xb4] ss:$8 sps:$4 sm:$0xff]  }
   0x9   :  { %266 = vmatprep.mubr.bf16.mxu0 %v298_v14  ;;  %v368_v25 = vld [vmem:[%s508_s1 + $0xb0] ss:$8 sps:$4 sm:$0xff]   ;;  %v369_v26 = vld [vmem:[%s508_s1 + $0xc4] ss:$8 sps:$4 sm:$0xff]   ;;  %v371_v27 = vld [vmem:[%s508_s1 + $0xc0] ss:$8 sps:$4 sm:$0xff]  }
   0xa   :  { %v372_v28 = vld [vmem:[%s508_s1 + $0xd4] ss:$8 sps:$4 sm:$0xff]   ;;  %v374_v29 = vld [vmem:[%s508_s1 + $0xd0] ss:$8 sps:$4 sm:$0xff]   ;;  %v375_v30 = vld [vmem:[%s508_s1 + $0xe4] ss:$8 sps:$4 sm:$0xff]  }
   0xb   :  { %239 = vmatpush1.bf16.msra.mxu0 %v341_v5  ;;  %v377_v31 = vld [vmem:[%s508_s1 + $0xe0] ss:$8 sps:$4 sm:$0xff]   ;;  %v378_v32 = vld [vmem:[%s508_s1 + $0xf4] ss:$8 sps:$4 sm:$0xff]   ;;  %v380_v33 = vld [vmem:[%s508_s1 + $0xf0] ss:$8 sps:$4 sm:$0xff]  }
   0xc   :  { %240 = vmatprep.subr.bf16.mxu0 %v342_v6  ;;  %v22_v37 = vsub.s32 0, %v21_v36  ;;  %v18_v38 = vld [vmem:[%s510_s2] sm:$0x3]  ;;  %v26_v39 = vsub.s32 1, %v21_v36 }
   0xe   :  { %v23_v40 = vrot.slane %v18_v38, %v22_v37  ;;  %v27_v41 = vrot.slane %v18_v38, %v26_v39 }
   0xf   :  { %241 = vmatpush1.bf16.msra.mxu0 %v344_v7 }
  0x10   :  { %242 = vmatprep.subr.bf16.mxu0 %v345_v8 }
  0x13   :  { %243 = vmatpush1.bf16.msra.mxu0 %v347_v9 }
  0x14   :  { %244 = vmatprep.subr.bf16.mxu0 %v348_v10 }
  0x17   :  { %245 = vmatpush1.bf16.msra.mxu0 %v350_v11 }
  0x18   :  { %246 = vmatprep.subr.bf16.mxu0 %v351_v12 }
  0x1b   :  { %247 = vmatpush1.bf16.msra.mxu0 %v353_v15 }
  0x1c   :  { %248 = vmatprep.subr.bf16.mxu0 %v354_v16 }
  0x1f   :  { %249 = vmatpush1.bf16.msra.mxu0 %v356_v17 }
  0x20   :  { %250 = vmatprep.subr.bf16.mxu0 %v357_v18 }
  0x23   :  { %251 = vmatpush1.bf16.msra.mxu0 %v359_v19 }
  0x24   :  { %252 = vmatprep.subr.bf16.mxu0 %v360_v20 }
  0x27   :  { %253 = vmatpush1.bf16.msra.mxu0 %v362_v21 }
  0x28   :  { %254 = vmatprep.subr.bf16.mxu0 %v363_v22 }
  0x2b   :  { %255 = vmatpush1.bf16.msra.mxu0 %v365_v23 }
  0x2c   :  { %256 = vmatprep.subr.bf16.mxu0 %v366_v24 }
  0x2f   :  { %257 = vmatpush1.bf16.msra.mxu0 %v368_v25 }
  0x30   :  { %258 = vmatprep.subr.bf16.mxu0 %v369_v26 }
  0x33   :  { %259 = vmatpush1.bf16.msra.mxu0 %v371_v27 }
  0x34   :  { %260 = vmatprep.subr.bf16.mxu0 %v372_v28 }
  0x37   :  { %261 = vmatpush1.bf16.msra.mxu0 %v374_v29 }
  0x38   :  { %262 = vmatprep.subr.bf16.mxu0 %v375_v30 }
  0x3b   :  { %263 = vmatpush1.bf16.msra.mxu0 %v377_v31 }
  0x3c   :  { %264 = vmatprep.subr.bf16.mxu0 %v378_v32 }
  0x3f   :  { %265 = vmatpush1.bf16.msra.mxu0 %v380_v33 }
  0x42   :  { %267 = vmatmul.mubr.bf16.vlgmr.msra.gmra.mrb[0].mxu0 %v297_v34 }
 0x115   :  { %v268_v42 = vpop.f32.mrb[0].mxu0 }
 0x116   :  { %v275_v43 = vadd.f32 %v268_v42, %v23_v40  ;;  %v270_v44 = vpop.f32.mrb[1].mxu0 }
 0x117   :  { %v276_v45 = vadd.f32 %v270_v44, %v27_v41  ;;  %v272_v46 = vpop.f32.mrb[2].mxu0 }
 0x118   :  { %v273_v47 = vpop.f32.mrb[3].mxu0 }
 0x119   :  { %v332_v48 = vpack.c.bf16 %v276_v45, %v275_v43 }
 0x11b   :  { %292 = vst [vmem:[%s511_s3] sm:$0xff] %v332_v48 }

</bundles_post_ra>
